<compile_context>
chip_gen: v5e
topology: v5e:2x2
jax: 0.10.0
libtpu: 0.0.40
codegen_flags: <defaults>
</compile_context>

<pallas_src>
import jax
import jax.numpy as jnp
from jax.experimental import pallas as pl
from jax.experimental.pallas import tpu as pltpu


def sts_kernel(x_ref, w_ref, b_ref, m_ref, out_ref):
    # x_ref  : (B_BLK, S, D)  bf16 token input embeddings for a block of batch elements
    # w_ref  : (D, H)         bf16 stand-in encoder projection (shared, constant index_map)
    # b_ref  : (1, H)         f32 bias
    # m_ref  : (B_BLK, S)     f32 attention mask
    # out_ref: (B_BLK, H)     f32 pooled sentence embeddings (lane-dense 2-D block)
    x = x_ref[...].astype(jnp.float32)                     # (B_BLK, S, D)
    m = m_ref[...]                                         # (B_BLK, S)

    msum = jnp.sum(m, axis=-1, keepdims=True)              # (B_BLK, 1) per-row mask sum
    denom = jnp.maximum(msum, 1e-9)                        # clamp(min=1e-9)

    # masked sum over the sequence axis: VPU multiply + sublane reduce (stays off the MXU)
    pooled = jnp.sum(x * m[:, :, None], axis=1)            # (B_BLK, D) f32

    # linear stand-in encoder applied after pooling (exploits linearity of the projection)
    proj = jnp.dot(pooled, w_ref[...].astype(jnp.float32),
                   preferred_element_type=jnp.float32,
                   precision=jax.lax.Precision.HIGHEST)    # (B_BLK, H) f32

    out_ref[...] = ((proj + msum * b_ref[...]) / denom).astype(out_ref.dtype)


def sts_forward(x, w, b, mask, *, b_blk=8):
    """x: (B,S,D) f32, w: (D,H), b: (H,), mask: (B,S) -> (B,H) sentence embeddings."""
    B, S, D = x.shape
    H = w.shape[1]

    # pad batch to a multiple of b_blk; padded rows get zero mask -> zero output, dropped
    B_pad = ((B + b_blk - 1) // b_blk) * b_blk
    if B_pad != B:
        x = jnp.pad(x, ((0, B_pad - B), (0, 0), (0, 0)))
        mask = jnp.pad(mask, ((0, B_pad - B), (0, 0)))

    xb = x.astype(jnp.bfloat16)                 # big tensor -> bf16 (half HBM/VMEM traffic)
    wb = w.astype(jnp.bfloat16)
    m = mask.astype(jnp.float32)
    b2 = b.reshape(1, H).astype(jnp.float32)

    grid = (B_pad // b_blk,)
    flops = 2 * B_pad * S * D + 2 * B_pad * D * H
    bytes_accessed = (xb.size * 2 + wb.size * 2 + b2.size * 4
                      + m.size * 4 + B_pad * H * 4)

    out = pl.pallas_call(
        sts_kernel,
        out_shape=jax.ShapeDtypeStruct((B_pad, H), jnp.float32),
        grid_spec=pltpu.PrefetchScalarGridSpec(
            num_scalar_prefetch=0,
            grid=grid,
            in_specs=[
                pl.BlockSpec((b_blk, S, D), lambda i: (i, 0, 0)),  # per-block tokens
                pl.BlockSpec((D, H), lambda i: (0, 0)),            # shared weight
                pl.BlockSpec((1, H), lambda i: (0, 0)),            # shared bias
                pl.BlockSpec((b_blk, S), lambda i: (i, 0)),        # per-block mask
            ],
            out_specs=pl.BlockSpec((b_blk, H), lambda i: (i, 0)),  # lane-dense 2-D output
        ),
        compiler_params=pltpu.CompilerParams(
            dimension_semantics=("parallel",),      # >=2 steps -> both v7x TensorCores
            vmem_limit_bytes=32 * 1024 * 1024,      # safe on v5e/v6e (128 MiB) and v7x (64 MiB)
        ),
        cost_estimate=pl.CostEstimate(
            flops=flops, transcendentals=0, bytes_accessed=bytes_accessed),
    )(xb, wb, b2, m)
    return out[:B]


# TODO(synk): the pretrained BERT encoder (AutoModel.from_pretrained) and string tokenizer
#             have no Pallas equivalent; a deterministic linear projection stands in.

if __name__ == "__main__":
    B, S, D, H = 16, 8, 128, 128
    key = jax.random.PRNGKey(0)
    kx, kw, kb = jax.random.split(key, 3)

    x = jax.random.normal(kx, (B, S, D), dtype=jnp.float32)        # synthetic token inputs
    w = jax.random.normal(kw, (D, H), dtype=jnp.float32) * 0.05    # deterministic "encoder"
    b = jax.random.normal(kb, (H,), dtype=jnp.float32) * 0.01
    # attention mask with varying amounts of trailing padding (one row fully masked
    # exercises the clamp(min=1e-9) path)
    lengths = jnp.array([8, 5, 8, 3, 1, 8, 0, 6, 8, 2, 7, 8, 4, 8, 5, 3], dtype=jnp.int32)
    mask = (jnp.arange(S)[None, :] < lengths[:, None]).astype(jnp.float32)

    out = sts_forward(x, w, b, mask)
    jax.block_until_ready(out)

    # reference in plain JAX (torch mean_pooling semantics: project per token, then pool),
    # using the same bf16-rounded inputs as the kernel
    xb = x.astype(jnp.bfloat16).astype(jnp.float32)
    wb = w.astype(jnp.bfloat16).astype(jnp.float32)
    tok = jnp.einsum("bsd,dh->bsh", xb, wb, precision="highest") + b
    me = mask[:, :, None]
    ref = jnp.sum(tok * me, axis=1) / jnp.maximum(jnp.sum(me, axis=1), 1e-9)

    # tolerance covers f32 accumulation-order differences (pool-then-project vs project-then-pool)
    assert jnp.allclose(out, ref, atol=1e-3, rtol=1e-3), "mismatch vs reference"

    print("KERNEL_OK")
</pallas_src>

<mosaic_0001>
module attributes {stable_mosaic.version = 11 : i64} {
  func.func @sts_kernel(%arg0: i32, %arg1: memref<8x8x128xbf16, #tpu.memory_space<vmem>>, %arg2: memref<128x128xbf16, #tpu.memory_space<vmem>>, %arg3: memref<1x128xf32, #tpu.memory_space<vmem>>, %arg4: memref<8x8xf32, #tpu.memory_space<vmem>>, %arg5: memref<8x128xf32, #tpu.memory_space<vmem>>) attributes {dimension_semantics = [#tpu.dimension_semantics<parallel>], iteration_bounds = array<i64: 2>, scalar_prefetch = 0 : i64, scratch_operands = 0 : i64, tpu.core_type = #tpu.core_type<tc>, window_params = [{transform_indices = @transform_0, window_bounds = array<i64: 8, 8, 128>}, {pipeline_mode = #tpu.pipeline_mode<synchronous>, transform_indices = @transform_1, window_bounds = array<i64: 128, 128>}, {pipeline_mode = #tpu.pipeline_mode<synchronous>, transform_indices = @transform_2, window_bounds = array<i64: 1, 128>}, {transform_indices = @transform_3, window_bounds = array<i64: 8, 8>}, {transform_indices = @transform_4, window_bounds = array<i64: 8, 128>}]} {
    %c0 = arith.constant 0 : index
    %c0_0 = arith.constant 0 : index
    %c0_1 = arith.constant 0 : index
    %0 = vector.load %arg1[%c0, %c0_0, %c0_1] : memref<8x8x128xbf16, #tpu.memory_space<vmem>>, vector<8x8x128xbf16>
    %1 = arith.extf %0 : vector<8x8x128xbf16> to vector<8x8x128xf32>
    %c0_2 = arith.constant 0 : index
    %c0_3 = arith.constant 0 : index
    %2 = vector.load %arg4[%c0_2, %c0_3] : memref<8x8xf32, #tpu.memory_space<vmem>>, vector<8x8xf32>
    %cst = arith.constant dense<0.000000e+00> : vector<8xf32>
    %3 = vector.multi_reduction <add>, %2, %cst [1] : vector<8x8xf32> to vector<8xf32>
    %4 = vector.shape_cast %3 : vector<8xf32> to vector<8x1xf32>
    %cst_4 = arith.constant 9.99999971E-10 : f32
    %5 = vector.broadcast %cst_4 : f32 to vector<8x1xf32>
    %6 = arith.maximumf %4, %5 : vector<8x1xf32>
    %7 = vector.shape_cast %2 : vector<8x8xf32> to vector<8x8x1xf32>
    %8 = vector.broadcast %7 : vector<8x8x1xf32> to vector<8x8x128xf32>
    %9 = arith.mulf %1, %8 : vector<8x8x128xf32>
    %cst_5 = arith.constant dense<0.000000e+00> : vector<8x128xf32>
    %10 = vector.multi_reduction <add>, %9, %cst_5 [1] : vector<8x8x128xf32> to vector<8x128xf32>
    %c0_6 = arith.constant 0 : index
    %c0_7 = arith.constant 0 : index
    %11 = vector.load %arg2[%c0_6, %c0_7] : memref<128x128xbf16, #tpu.memory_space<vmem>>, vector<128x128xbf16>
    %12 = arith.extf %11 : vector<128x128xbf16> to vector<128x128xf32>
    %cst_8 = arith.constant dense<0.000000e+00> : vector<8x128xf32>
    %13 = tpu.matmul %10, %12, %cst_8 {dimension_numbers = #tpu.dot_dimension_numbers<[1], [0], [0], [1], [0, 0, 1, 1], [], []>, precision = #tpu.contract_precision<fp32>} : vector<8x128xf32>, vector<128x128xf32>, vector<8x128xf32> -> vector<8x128xf32>
    %c0_9 = arith.constant 0 : index
    %c0_10 = arith.constant 0 : index
    %14 = vector.load %arg3[%c0_9, %c0_10] : memref<1x128xf32, #tpu.memory_space<vmem>>, vector<1x128xf32>
    %15 = vector.broadcast %4 : vector<8x1xf32> to vector<8x128xf32>
    %16 = vector.broadcast %14 : vector<1x128xf32> to vector<8x128xf32>
    %17 = arith.mulf %15, %16 : vector<8x128xf32>
    %18 = arith.addf %13, %17 : vector<8x128xf32>
    %19 = vector.broadcast %6 : vector<8x1xf32> to vector<8x128xf32>
    %20 = arith.divf %18, %19 : vector<8x128xf32>
    %c0_11 = arith.constant 0 : index
    %c0_12 = arith.constant 0 : index
    %21 = vector.load %arg5[%c0_11, %c0_12] : memref<8x128xf32, #tpu.memory_space<vmem>>, vector<8x128xf32>
    tpu.vector_store %arg5[%c0_11, %c0_12], %20 {strides = array<i32>} : memref<8x128xf32, #tpu.memory_space<vmem>>, vector<8x128xf32>,
    return
  }
  func.func @transform_0(%arg0: i32) -> (i32, i32, i32) {
    %c0_i32 = arith.constant 0 : i32
    %c0_i32_0 = arith.constant 0 : i32
    %c0_i32_1 = arith.constant 0 : i32
    return %arg0, %c0_i32, %c0_i32_0 : i32, i32, i32
  }
  func.func @transform_1(%arg0: i32) -> (i32, i32) {
    %c0_i32 = arith.constant 0 : i32
    %c0_i32_0 = arith.constant 0 : i32
    %c0_i32_1 = arith.constant 0 : i32
    return %c0_i32, %c0_i32_0 : i32, i32
  }
  func.func @transform_2(%arg0: i32) -> (i32, i32) {
    %c0_i32 = arith.constant 0 : i32
    %c0_i32_0 = arith.constant 0 : i32
    %c0_i32_1 = arith.constant 0 : i32
    return %c0_i32, %c0_i32_0 : i32, i32
  }
  func.func @transform_3(%arg0: i32) -> (i32, i32) {
    %c0_i32 = arith.constant 0 : i32
    %c0_i32_0 = arith.constant 0 : i32
    return %arg0, %c0_i32 : i32, i32
  }
  func.func @transform_4(%arg0: i32) -> (i32, i32) {
    %c0_i32 = arith.constant 0 : i32
    %c0_i32_0 = arith.constant 0 : i32
    return %arg0, %c0_i32 : i32, i32
  }
}

</mosaic_0001>

<bundles_post_ra>
// kernel: tpu_custom_call.1
= control target key start
LH: loop header
LB: loop body
LE: loop exit
PB: predicated region body
PF: predicated region fallthrough
CT: control target
= control target key end

     0   :  { %9 = vsyncpa [#allocation3], 0  ;;  %s1534_s0 = inlined_call_operand.hbm [shape: bf16[16,8,128], index: 0, kind: input, shape index: {}]   ;;  %s1535_s1 = inlined_call_operand.hbm [shape: bf16[128,128], index: 1, kind: input, shape index: {}]   ;;  %s1536_s2 = inlined_call_operand.vmem [shape: f32[1,128], index: 2, kind: input, shape index: {}]   ;;  %s1537_s3 = inlined_call_operand.vmem [shape: f32[16,8], index: 3, kind: input, shape index: {}]   ;;  %s1538_s4 = inlined_call_operand.hbm [shape: f32[16,128], index: 4, kind: output, shape index: {}]  }
   0x1   :  { %11 = vsyncpa [#allocation3 + $0x1], 0 }
   0x2   :  { %12 = vsyncpa [#allocation6], 0 }
   0x3   :  { %13 = vsyncpa [#allocation4], 0 }
   0x4   :  { %15 = vsyncpa [#allocation4 + $0x1], 0  ;;  %s1116_s15 = smov 0   ;;  %s1118_s16 = smov 0  }
   0x5   :  { %s1120_s17 = smov 0   ;;  %s1122_s18 = smov 0  }
   0x6 LB: > { %s1137_s19 = sadd.s32 4294967295, %s1086_s18   ;;  %s816_s20 = sadd.s32 4294967294, %s1086_s18   ;;  %s1086_s18 = sphi %s1122_s18, %s1548_s18   ;;  %s1082_s17 = sphi %s1120_s17, %s1547_s17   ;;  %s1078_s16 = sphi %s1118_s16, %s1546_s16   ;;  %s1074_s15 = sphi %s1116_s15, %s1545_s15  }
   0x7   : > { %p41_p0 = scmp.ne.s32.totalorder %s1078_s16, %s1074_s15  ;;  %p42_p1 = scmp.eq.s32.totalorder %s1137_s19, 0 }
   0x8   : > { %p133_p2 = scmp.eq.s32.totalorder %s1137_s19, 1  ;;  %p139_p3 = scmp.eq.s32.totalorder %s816_s20, 1 }
   0x9   : > { %p1146_p4 = por %p42_p1, %p41_p0  ;;  %p817_p5 = scmp.ge.s32.totalorder %s1086_s18, 1 }
   0xa   : > { %p1151_p6 = por %p139_p3, %p41_p0  ;;  %p146_p7 = scmp.lt.s32.totalorder %s1086_s18, 3 }
   0xb   : > { %s157_s25 = sshll.u32 %s1535_s1, 4  ;;  %s1088_s27 = smov [#allocation5]   ;;  %s158_s25 = int_to_ptr.hbm [resolvable:$true] %s157_s25 }
   0xc   : > { %p1159_p8 = pnand %p817_p5, %p146_p7  ;;  %s159_s28 = sshll.u32 %s1088_s27, 4  ;;  %s160_s28 = int_to_ptr.vmem [resolvable:$true] %s159_s28 }
   0xd   : > { %s1169_s29 = sadd.s32 1, %s1086_s18   ;;  %s1089_s30 = smov 64  }
   0xe   : > { %p899_p9 = pneg %p1159_p8  ;;  %s1090_s5 = smov 4  }
   0xf   : > { %s25_s6 = ssub.s32 %s1086_s18, %s1169_s29  ;;  %s28_s7 = sadd.s32 1, %s1082_s17 }
  0x10   : > { %p900_p10 = pnand %p899_p9, %p42_p1  ;;  %p26_p12 = scmp.eq.s32.totalorder %s25_s6, 0 }
  0x11   : > { %p35_p13 = scmp.ne.s32.totalorder %s1082_s17, %s1078_s16  ;;  %p36_p0 = scmp.eq.s32.totalorder %s1086_s18, 0 }
  0x12   : > { %902 = dma.hbm_to_vmem [thread:$0]  (!%p900_p10), %s158_s25, 1024, %s160_s28, [#allocation6], %s1089_s30, %s1089_s30, %s1090_s5  }
  0x13   : > { %s1181_s8 = scalar_select %p26_p12, %s1082_s17, %s28_s7  }
  0x14   : > { %p1185_p3 = por %p133_p2, %p35_p13  ;;  %p912_p5 = scmp.lt.s32.totalorder %s1086_s18, 2 }
  0x15   : > { %s176_s10 = sand.u32 1, %s1082_s17   ;;  %s832_s11 = sshll.u32 %s1086_s18, 5 }
  0x16   : > { %p37_p7 = por %p36_p0, %p35_p13  ;;  %s820_s12 = sshll.u32 %s176_s10, 5 }
  0x17   : > { %s185_s20 = scalar_lea.hbm %s1534_s0, %s832_s11  ;;  %s180_s24 = scalar_lea.vmem [#allocation2], %s820_s12 }
  0x18   : > { %s186_s23 = sshll.u32 %s185_s20, 4  ;;  %s188_s25 = sshll.u32 %s180_s24, 4  ;;  %s187_s23 = int_to_ptr.hbm [resolvable:$true] %s186_s23  ;;  %s189_s25 = int_to_ptr.vmem [resolvable:$true] %s188_s25 }
  0x19   : > { %p1195_p9 = pnand %p912_p5, %p37_p7  ;;  %s177_s28 = scalar_lea.sflag [#allocation3], %s176_s10 }
  0x1a   : > { %s986_s6 = sshra.s32 %s187_s23, 4  ;;  %s993_s12 = scalar_lea.hbm %s1534_s0, 64  ;;  %s987_s6 = int_to_ptr.hbm [resolvable:$true] %s986_s6 }
  0x1b   : > { %s988_s7 = scalar_lea.hbm %s987_s6, 32  ;;  %p990_p10 = pneg %p1195_p9 }
  0x1c   : > { %p989_p2 = scmp.ne.s32.totalorder %s987_s6, %s988_s7  ;;  %p994_p0 = scmp.lt.s32.totalorder %s987_s6, %s1534_s0 }
  0x1d   : > { %p995_p5 = scmp.lt.s32.totalorder %s993_s12, %s988_s7 }
  0x1e   : > { %p991_p12 = pnand %p990_p10, %p989_p2 }
  0x1f   : > { %p996_p7 = por %p995_p5, %p994_p0 }
  0x20   : > { %p992_p13 = pneg %p991_p12 }
  0x22   : > { %p997_p11 = pnand %p996_p7, %p992_p13 }
  0x24   : > { %1000 = shalt.err (!%p997_p11)
}
  0x25   : > { %906 = dma.hbm_to_vmem [thread:$0]  (!%p1195_p9), %s187_s23, 512, %s189_s25, %s177_s28, %s1089_s30, %s1089_s30, %s1090_s5  }
  0x26   : > { %207 = sbr.rel (%p1159_p8) target bundleno = 358 (0x166), region = 36  ;;  %s1215_s10 = sand.u32 (!%p1159_p8), 1, %s1078_s16  }
  0x27   : > { %s824_s24 = sshll.u32 (!%p1159_p8), %s1215_s10, 5  ;;  %s210_s6 = scalar_lea.sflag (!%p1159_p8), [#allocation3], %s1215_s10 }
  0x28   : > { %s1219_s7 = scalar_lea.vmem (!%p1159_p8), [#allocation2], %s824_s24 }
  0x2b   : > { %1061 = dma.done.wait (%p1146_p4), %s210_s6, 512  }
  0x2c   : > { %1063 = vsyncadd (%p1146_p4), %s210_s6, 4294966784 }
  0x2d   : > { %1065 = dma.done.wait (%p42_p1), [#allocation6], 1024  }
  0x2e   : > { %1067 = vsyncadd (%p42_p1), [#allocation6], 4294966272  ;;  %v276_v0 = vlaneseq  ;;  %p249_p8 = scmp.lt.s32.totalorder %s1137_s19, 1  ;;  %v890_v3 = vld [vmem:[#allocation5 + $0x38] sm:$0xff]   ;;  %v889_v4 = vld [vmem:[#allocation5 + $0x30] sm:$0xff]   ;;  %vm270_vm0 = vcmask 64512  }
  0x2f   : > { %v888_v7 = vld [vmem:[#allocation5 + $0x28] sm:$0xff]   ;;  %v1239_v9 = vunpack.c.h.bf16 %v890_v3  ;;  %v1241_v10 = vunpack.c.l.bf16 %v890_v3  ;;  %v1243_v11 = vunpack.c.h.bf16 %v889_v4  ;;  %v1245_v12 = vunpack.c.l.bf16 %v889_v4  ;;  %v1247_v13 = vld [vmem:[#allocation5 + $0x20] sm:$0xff]   ;;  %v886_v51 = vld [vmem:[#allocation5 + $0x18] sm:$0xff]   ;;  %s826_s28 = sshll.u32 %s1215_s10, 3  ;;  %s829_s11 = sshll.u32 %s1137_s19, 3 }
  0x30   : > { %v277_v1 = vshrl.u32 %v276_v0, 7  ;;  %s250_s26 = scalar_select %p249_p8, %s1137_s19, 1  ;;  %v1249_v14 = vunpack.c.h.bf16 %v888_v7  ;;  %v1251_v15 = vunpack.c.l.bf16 %v888_v7  ;;  %v1275_v21 = vunpack.c.h.bf16 %v1247_v13  ;;  %v885_v57 = vld [vmem:[#allocation5 + $0x10] sm:$0xff]   ;;  %v884_v4 = vld [vmem:[#allocation5 + $0x8] sm:$0xff]  }
  0x31   : > { %v1255_v16 = vsub.f32 %v1239_v9, %v1239_v9  ;;  %v1259_v17 = vsub.f32 %v1241_v10, %v1241_v10  ;;  %v1263_v18 = vsub.f32 %v1243_v11, %v1243_v11  ;;  %v1267_v19 = vsub.f32 %v1245_v12, %v1245_v12  ;;  %447 = vmatpush.msra.mxu0 %v1239_v9  ;;  %s719_s14 = scalar_lea.hbm %s1538_s4, %s829_s11  ;;  %s247_s20 = scalar_lea.vmem [#allocation7], %s826_s28 }
  0x32   : > { %951 = vset.pattern.permute.xlu1 %v277_v1  ;;  %950 = vset.pattern.permute.xlu0 %v277_v1  ;;  %s827_s30 = sshll.u32 %s250_s26, 3  ;;  %v1272_v20 = vsub.f32 %v1249_v14, %v1249_v14  ;;  %v1286_v26 = vsub.f32 %v1251_v15, %v1251_v15  ;;  %v1306_v34 = vsub.f32 %v1275_v21, %v1275_v21  ;;  %v1339_v50 = vunpack.c.l.bf16 %v1247_v13  ;;  %s721_s19 = sshll.u32 %s247_s20, 4  ;;  %s722_s19 = int_to_ptr.vmem [resolvable:$true] %s721_s19 }
  0x33   : > { %s252_s21 = scalar_lea.vmem %s1537_s3, %s827_s30  ;;  %952 = vset.pattern.permute.xlu2 %v277_v1  ;;  %v473_v22 = vand.u32 4294901760, %v1255_v16  ;;  %v478_v23 = vand.u32 4294901760, %v1259_v17  ;;  %v483_v24 = vand.u32 4294901760, %v1263_v18  ;;  %558 = vmatpush.msra.mxu2 %v1255_v16  ;;  %v488_v25 = vand.u32 4294901760, %v1267_v19  ;;  %s723_s24 = sshll.u32 %s719_s14, 4  ;;  %s724_s24 = int_to_ptr.hbm [resolvable:$true] %s723_s24 }
  0x34   : > { %v1234_v2 = vld [vmem:[%s252_s21] sm:$0xff]  ;;  %595 = vmatpush.msra.mxu3 %v1239_v9  ;;  %448 = vmatpush.msra.mxu0 %v1241_v10  ;;  %v493_v33 = vand.u32 4294901760, %v1272_v20  ;;  %v498_v38 = vand.u32 4294901760, %v1286_v26  ;;  %v503_v41 = vand.u32 4294901760, %v1306_v34  ;;  %v1343_v52 = vsub.f32 %v1339_v50, %v1339_v50  ;;  %s709_s6 = scalar_lea.sflag [#allocation4], %s1215_s10  ;;  %s1036_s23 = scalar_lea.hbm %s1538_s4, 16 }
  0x35   : > { %v289_v5 = vperm.slane %v1234_v2, 2  ;;  %v275_v6 = vperm.slane %v1234_v2, 0  ;;  %v303_v8 = vperm.slane %v1234_v2, 4  ;;  %v296_v27 = vperm.slane %v1234_v2, 3  ;;  %560 = vmatpush.msra.mxu2 %v1259_v17 }
  0x36   : > { %v282_v28 = vperm.slane %v1234_v2, 1  ;;  %v474_v29 = vsub.f32 %v1255_v16, %v473_v22  ;;  %v479_v30 = vsub.f32 %v1259_v17, %v478_v23  ;;  %596 = vmatpush.msra.mxu3 %v1241_v10  ;;  %v310_v31 = vperm.slane %v1234_v2, 5  ;;  %449 = vmatpush.msra.mxu0 %v1243_v11 }
  0x37   : > { %v484_v32 = vsub.f32 %v1263_v18, %v483_v24  ;;  %562 = vmatpush.msra.mxu2 %v1263_v18  ;;  %v489_v37 = vsub.f32 %v1267_v19, %v488_v25  ;;  %v494_v40 = vsub.f32 %v1272_v20, %v493_v33  ;;  %v499_v43 = vsub.f32 %v1286_v26, %v498_v38 }
  0x38   : > { %v475_v35 = vand.u32 4294901760, %v474_v29  ;;  %597 = vmatpush.msra.mxu3 %v1243_v11  ;;  %v480_v36 = vand.u32 4294901760, %v479_v30  ;;  %450 = vmatpush.msra.mxu0 %v1245_v12  ;;  %v324_v44 = vperm.slane %v1234_v2, 7  ;;  %v317_v45 = vperm.slane %v1234_v2, 6 }
  0x39   : > { %v485_v39 = vand.u32 4294901760, %v484_v32  ;;  %564 = vmatpush.msra.mxu2 %v1267_v19  ;;  %v490_v42 = vand.u32 4294901760, %v489_v37  ;;  %v495_v46 = vand.u32 4294901760, %v494_v40  ;;  %v504_v47 = vsub.f32 %v1306_v34, %v503_v41  ;;  %v850_v32 = vld [vmem:[#allocation5] sm:$0xff]  }
  0x3a   : > { %294 = vperm.xlu1 %951, %v289_v5   ;;  %280 = vperm.xlu0 %950, %v275_v6   ;;  %v500_v48 = vand.u32 4294901760, %v499_v43  ;;  %v1345_v53 = vunpack.c.h.bf16 %v886_v51  ;;  %v508_v54 = vand.u32 4294901760, %v1343_v52  ;;  %v1354_v56 = vunpack.c.l.bf16 %v886_v51 }
  0x3b   : > { %308 = vperm.xlu2 %952, %v303_v8   ;;  %476 = vmatpush.msra.mxu1 %v475_v35  ;;  %v505_v49 = vand.u32 4294901760, %v504_v47  ;;  %v1367_v61 = vunpack.c.h.bf16 %v885_v57  ;;  %v1382_v3 = vunpack.c.l.bf16 %v885_v57  ;;  %v1389_v8 = vunpack.c.h.bf16 %v884_v4 }
  0x3c   : > { %451 = vmatpush.msra.mxu0 %v1249_v14  ;;  %598 = vmatpush.msra.mxu3 %v1245_v12  ;;  %v1352_v55 = vsub.f32 %v1345_v53, %v1345_v53  ;;  %v509_v58 = vsub.f32 %v1343_v52, %v508_v54  ;;  %v1365_v60 = vsub.f32 %v1354_v56, %v1354_v56  ;;  %v1405_v30 = vunpack.c.l.bf16 %v884_v4 }
  0x3d   : > { %481 = vmatpush.msra.mxu1 %v480_v36  ;;  %566 = vmatpush.msra.mxu2 %v1272_v20  ;;  %v1378_v1 = vsub.f32 %v1367_v61, %v1367_v61  ;;  %v1394_v13 = vsub.f32 %v1382_v3, %v1382_v3  ;;  %v1403_v29 = vsub.f32 %v1389_v8, %v1389_v8  ;;  %v1419_v40 = vunpack.c.h.bf16 %v850_v32 }
  0x3e   : > { %452 = vmatpush.msra.mxu0 %v1251_v15  ;;  %599 = vmatpush.msra.mxu3 %v1249_v14  ;;  %v513_v59 = vand.u32 4294901760, %v1352_v55  ;;  %v510_v62 = vand.u32 4294901760, %v509_v58  ;;  %v518_v0 = vand.u32 4294901760, %v1365_v60  ;;  %v1426_v43 = vunpack.c.l.bf16 %v850_v32 }
  0x3f   : > { %486 = vmatpush.msra.mxu1 %v485_v39  ;;  %568 = vmatpush.msra.mxu2 %v1286_v26  ;;  %v523_v7 = vand.u32 4294901760, %v1378_v1  ;;  %v533_v36 = vand.u32 4294901760, %v1403_v29  ;;  %v1417_v39 = vsub.f32 %v1405_v30, %v1405_v30  ;;  %vm432_vm1 = vcmask 1041409  }
  0x40   : > { %453 = vmatpush.msra.mxu0 %v1275_v21  ;;  %600 = vmatpush.msra.mxu3 %v1251_v15  ;;  %v514_v63 = vsub.f32 %v1352_v55, %v513_v59  ;;  %v519_v6 = vsub.f32 %v1365_v60, %v518_v0  ;;  %vm434_vm2 = vcmask 1042434   ;;  %vm436_vm3 = vcmask 1043459  }
  0x41   : > { %491 = vmatpush.msra.mxu1 %v490_v42  ;;  %570 = vmatpush.msra.mxu2 %v1306_v34  ;;  %v534_v42 = vsub.f32 %v1403_v29, %v533_v36  ;;  %vm438_vm4 = vcmask 1044484   ;;  %vm440_vm5 = vcmask 1045509   ;;  %vm442_vm6 = vcmask 1046534  }
  0x42   : > { %301 = vperm.xlu1 %951, %v296_v27   ;;  %287 = vperm.xlu0 %950, %v282_v28   ;;  %v515_v5 = vand.u32 4294901760, %v514_v63  ;;  %v520_v27 = vand.u32 4294901760, %v519_v6  ;;  %v524_v28 = vsub.f32 %v1378_v1, %v523_v7  ;;  %vm444_vm7 = vcmask 1047559  }
  0x43   : > { %315 = vperm.xlu2 %952, %v310_v31   ;;  %496 = vmatpush.msra.mxu1 %v495_v46  ;;  %v528_v31 = vand.u32 4294901760, %v1394_v13  ;;  %v1432_v46 = vsub.f32 %v1419_v40, %v1419_v40  ;;  %v535_v47 = vand.u32 4294901760, %v534_v42 }
  0x44   : > { %601 = vmatpush.msra.mxu3 %v1275_v21  ;;  %454 = vmatpush.msra.mxu0 %v1339_v50  ;;  %v525_v35 = vand.u32 4294901760, %v524_v28 }
  0x45   : > { %501 = vmatpush.msra.mxu1 %v500_v48  ;;  %572 = vmatpush.msra.mxu2 %v1343_v52  ;;  %v529_v37 = vsub.f32 %v1394_v13, %v528_v31  ;;  %v1438_v48 = vsub.f32 %v1426_v43, %v1426_v43  ;;  %v543_v51 = vand.u32 4294901760, %v1432_v46 }
  0x46   : > { %602 = vmatpush.msra.mxu3 %v1339_v50  ;;  %455 = vmatpush.msra.mxu0 %v1345_v53 }
  0x47   : > { %506 = vmatpush.msra.mxu1 %v505_v49  ;;  %574 = vmatpush.msra.mxu2 %v1352_v55  ;;  %v548_v57 = vand.u32 4294901760, %v1438_v48 }
  0x48   : > { %603 = vmatpush.msra.mxu3 %v1345_v53  ;;  %456 = vmatpush.msra.mxu0 %v1354_v56 }
  0x49   : > { %576 = vmatpush.msra.mxu2 %v1365_v60  ;;  %511 = vmatpush.msra.mxu1 %v510_v62  ;;  %v544_v62 = vsub.f32 %v1432_v46, %v543_v51  ;;  %v549_v63 = vsub.f32 %v1438_v48, %v548_v57 }
  0x4a   : > { %329 = vperm.xlu1 %951, %v324_v44   ;;  %322 = vperm.xlu0 %950, %v317_v45   ;;  %v530_v44 = vand.u32 4294901760, %v529_v37  ;;  %v538_v45 = vand.u32 4294901760, %v1417_v39 }
  0x4b   : > { %604 = vmatpush.msra.mxu3 %v1354_v56  ;;  %457 = vmatpush.msra.mxu0 %v1367_v61  ;;  %v545_v4 = vand.u32 4294901760, %v544_v62 }
  0x4c   : > { %578 = vmatpush.msra.mxu2 %v1378_v1  ;;  %516 = vmatpush.msra.mxu1 %v515_v5  ;;  %v539_v49 = vsub.f32 %v1417_v39, %v538_v45  ;;  %v550_v5 = vand.u32 4294901760, %v549_v63 }
  0x4d   : > { %605 = vmatpush.msra.mxu3 %v1367_v61  ;;  %458 = vmatpush.msra.mxu0 %v1382_v3 }
  0x4e   : > { %580 = vmatpush.msra.mxu2 %v1394_v13  ;;  %521 = vmatpush.msra.mxu1 %v520_v27  ;;  %v540_v58 = vand.u32 4294901760, %v539_v49 }
  0x4f   : > { %606 = vmatpush.msra.mxu3 %v1382_v3  ;;  %459 = vmatpush.msra.mxu0 %v1389_v8 }
  0x50   : > { %582 = vmatpush.msra.mxu2 %v1403_v29  ;;  %526 = vmatpush.msra.mxu1 %v525_v35 }
  0x51   : > { %607 = vmatpush.msra.mxu3 %v1389_v8  ;;  %460 = vmatpush.msra.mxu0 %v1405_v30 }
  0x52   : > { %584 = vmatpush.msra.mxu2 %v1417_v39  ;;  %531 = vmatpush.msra.mxu1 %v530_v44 }
  0x53   : > { %608 = vmatpush.msra.mxu3 %v1405_v30  ;;  %461 = vmatpush.msra.mxu0 %v1419_v40 }
  0x54   : > { %586 = vmatpush.msra.mxu2 %v1432_v46  ;;  %536 = vmatpush.msra.mxu1 %v535_v47 }
  0x55   : > { %609 = vmatpush.msra.mxu3 %v1419_v40  ;;  %462 = vmatpush.msra.mxu0 %v1426_v43 }
  0x56   : > { %588 = vmatpush.msra.mxu2 %v1438_v48  ;;  %541 = vmatpush.msra.mxu1 %v540_v58 }
  0x57   : > { %620 = vmatpush.msrb.mxu0 %v473_v22  ;;  %610 = vmatpush.msra.mxu3 %v1426_v43 }
  0x58   : > { %546 = vmatpush.msra.mxu1 %v545_v4 }
  0x59   : > { %623 = vmatpush.msrb.mxu0 %v478_v23 }
  0x5a   : > { %551 = vmatpush.msra.mxu1 %v550_v5 }
  0x5b   : > { %626 = vmatpush.msrb.mxu0 %v483_v24 }
  0x5c   : > { %671 = vmatpush.msrb.mxu1 %v1239_v9 }
  0x5d   : > { %629 = vmatpush.msrb.mxu0 %v488_v25 }
  0x5e   : > { %672 = vmatpush.msrb.mxu1 %v1241_v10  ;;  %v882_v10 = vld [vmem:[%s1219_s7 + $0x10] sm:$0xff]  }
  0x5f   : > { %632 = vmatpush.msrb.mxu0 %v493_v33 }
  0x60   : > { %673 = vmatpush.msrb.mxu1 %v1243_v11  ;;  %v881_v11 = vld [vmem:[%s1219_s7 + $0x8] sm:$0xff]  }
  0x61   : > { %635 = vmatpush.msrb.mxu0 %v498_v38  ;;  %v839_v16 = vunpack.c.l.bf16 %v881_v11  ;;  %v840_v38 = vunpack.c.h.bf16 %v881_v11 }
  0x62   : > { %674 = vmatpush.msrb.mxu1 %v1245_v12  ;;  %v834_v12 = vld [vmem:[%s1219_s7] sm:$0xff]  }
  0x63   : > { %638 = vmatpush.msrb.mxu0 %v503_v41  ;;  %v835_v17 = vunpack.c.l.bf16 %v834_v12  ;;  %v836_v41 = vunpack.c.h.bf16 %v834_v12 }
  0x64   : > { %675 = vmatpush.msrb.mxu1 %v1249_v14  ;;  %v843_v14 = vunpack.c.l.bf16 %v882_v10 }
  0x65   : > { %641 = vmatpush.msrb.mxu0 %v508_v54 }
  0x66   : > { %676 = vmatpush.msrb.mxu1 %v1251_v15  ;;  %v271_v15 = vsel %vm270_vm0, %v1234_v2, 0.0 }
  0x67   : > { %644 = vmatpush.msrb.mxu0 %v513_v59 }
  0x68   : > { %677 = vmatpush.msrb.mxu1 %v1275_v21  ;;  %v844_v21 = vunpack.c.h.bf16 %v882_v10 }
  0x69   : > { %647 = vmatpush.msrb.mxu0 %v518_v0  ;;  %v883_v0 = vld [vmem:[%s1219_s7 + $0x18] sm:$0xff]   ;;  %s1030_s7 = sshra.s32 %s724_s24, 4  ;;  %s1031_s7 = int_to_ptr.hbm [resolvable:$true] %s1030_s7 }
  0x6a   : > { %678 = vmatpush.msrb.mxu1 %v1339_v50  ;;  %v848_v28 = vunpack.c.h.bf16 %v883_v0  ;;  %v847_v29 = vunpack.c.l.bf16 %v883_v0  ;;  %s1032_s26 = scalar_lea.hbm %s1031_s7, 8  ;;  %p1037_p9 = scmp.lt.s32.totalorder %s1031_s7, %s1538_s4 }
  0x6b   : > { %650 = vmatpush.msrb.mxu0 %v523_v7  ;;  %p1033_p1 = scmp.ne.s32.totalorder %s1031_s7, %s1032_s26  ;;  %p1038_p2 = scmp.lt.s32.totalorder %s1036_s23, %s1032_s26 }
  0x6c   : > { %679 = vmatpush.msrb.mxu1 %v1345_v53  ;;  %272 = vadd.xlane.f32.xlu2 %v271_v15 }
  0x6d   : > { %653 = vmatpush.msrb.mxu0 %v528_v31  ;;  %p1034_p4 = pnand %p1033_p1, %p1185_p3  ;;  %p1039_p10 = por %p1038_p2, %p1037_p9 }
  0x6e   : > { %680 = vmatpush.msrb.mxu1 %v1354_v56 }
  0x6f   : > { %656 = vmatpush.msrb.mxu0 %v533_v36  ;;  %p1035_p11 = pneg %p1034_p4 }
  0x70   : > { %681 = vmatpush.msrb.mxu1 %v1367_v61 }
  0x71   : > { %659 = vmatpush.msrb.mxu0 %v538_v45  ;;  %p1040_p12 = pnand %p1039_p10, %p1035_p11 }
  0x72   : > { %682 = vmatpush.msrb.mxu1 %v1382_v3 }
  0x73   : > { %662 = vmatpush.msrb.mxu0 %v543_v51 }
  0x74   : > { %683 = vmatpush.msrb.mxu1 %v1389_v8 }
  0x75   : > { %665 = vmatpush.msrb.mxu0 %v548_v57 }
  0x76   : > { %684 = vmatpush.msrb.mxu1 %v1405_v30 }
  0x78   : > { %685 = vmatpush.msrb.mxu1 %v1419_v40 }
  0x7a   : > { %686 = vmatpush.msrb.mxu1 %v1426_v43 }
  0x95   : > { %v309_v9 = vpop.permute.xlu2 %308 }
  0x96   : > { %v335_v18 = vmul.f32 %v843_v14, %v309_v9 }
  0x98   : > { %v363_v33 = vrot.slane %v335_v18, 4 }
  0x9a   : > { %v364_v52 = vadd.f32 %v363_v33, %v335_v18 }
  0x9c   : > { %v365_v6 = vrot.slane %v364_v52, 2 }
  0x9d   : > { %v316_v24 = vpop.permute.xlu2 %315 }
  0x9e   : > { %v336_v2 = vmul.f32 %v844_v21, %v316_v24  ;;  %v366_v35 = vadd.f32 %v365_v6, %v364_v52 }
  0xa0   : > { %v369_v54 = vrot.slane %v336_v2, 4  ;;  %v367_v57 = vrot.slane %v366_v35, 1 }
  0xa2   : > { %v370_v8 = vadd.f32 %v369_v54, %v336_v2  ;;  %v368_v15 = vadd.f32 %v367_v57, %v366_v35 }
  0xa4   : > { %v371_v37 = vrot.slane %v370_v8, 2 }
  0xa6   : > { %v372_v58 = vadd.f32 %v371_v37, %v370_v8 }
  0xac   : > { %v295_v19 = vpop.permute.xlu1 %294  ;;  %v281_v20 = vpop.permute.xlu0 %280 }
  0xad   : > { %v333_v22 = vmul.f32 %v839_v16, %v295_v19  ;;  %v331_v23 = vmul.f32 %v835_v17, %v281_v20  ;;  %v373_v16 = vrot.slane %v372_v58, 1 }
  0xaf   : > { %v351_v25 = vrot.slane %v333_v22, 4  ;;  %v339_v26 = vrot.slane %v331_v23, 4  ;;  %v374_v24 = vadd.f32 %v373_v16, %v372_v58 }
  0xb1   : > { %v340_v34 = vadd.f32 %v339_v26, %v331_v23  ;;  %v352_v50 = vadd.f32 %v351_v25, %v333_v22 }
  0xb3   : > { %v341_v53 = vrot.slane %v340_v34, 2  ;;  %v353_v61 = vrot.slane %v352_v50, 2 }
  0xb4   : > { %v302_v55 = vpop.permute.xlu1 %301  ;;  %v288_v56 = vpop.permute.xlu0 %287 }
  0xb5   : > { %v334_v59 = vmul.f32 %v840_v38, %v302_v55  ;;  %v332_v60 = vmul.f32 %v836_v41, %v288_v56  ;;  %v342_v7 = vadd.f32 %v341_v53, %v340_v34  ;;  %v354_v30 = vadd.f32 %v353_v61, %v352_v50 }
  0xb7   : > { %v357_v1 = vrot.slane %v334_v59, 4  ;;  %v345_v3 = vrot.slane %v332_v60, 4  ;;  %v343_v36 = vrot.slane %v342_v7, 1  ;;  %v355_v43 = vrot.slane %v354_v30, 1 }
  0xb9   : > { %v358_v13 = vadd.f32 %v357_v1, %v334_v59  ;;  %v346_v27 = vadd.f32 %v345_v3, %v332_v60  ;;  %v344_v62 = vadd.f32 %v343_v36, %v342_v7  ;;  %v356_v9 = vadd.f32 %v355_v43, %v354_v30  ;;  %v953_v60 = vld [vmem:[%s1536_s2] ss:$0 sm:$0xff] }
  0xbb   : > { %v359_v31 = vrot.slane %v358_v13, 2  ;;  %v347_v32 = vrot.slane %v346_v27, 2 }
  0xbc   : > { %v330_v39 = vpop.permute.xlu1 %329  ;;  %v323_v40 = vpop.permute.xlu0 %322 }
  0xbd   : > { %v360_v42 = vadd.f32 %v359_v31, %v358_v13  ;;  %v348_v44 = vadd.f32 %v347_v32, %v346_v27  ;;  %v338_v45 = vmul.f32 %v848_v28, %v330_v39  ;;  %v337_v46 = vmul.f32 %v847_v29, %v323_v40 }
  0xbf   : > { %v361_v47 = vrot.slane %v360_v42, 1  ;;  %v349_v48 = vrot.slane %v348_v44, 1  ;;  %v381_v49 = vrot.slane %v338_v45, 4  ;;  %v375_v51 = vrot.slane %v337_v46, 4 }
  0xc1   : > { %v350_v63 = vadd.f32 %v349_v48, %v348_v44  ;;  %v382_v4 = vadd.f32 %v381_v49, %v338_v45  ;;  %v376_v5 = vadd.f32 %v375_v51, %v337_v46  ;;  %v362_v10 = vadd.f32 %v361_v47, %v360_v42 }
  0xc3   : > { %v433_v11 = vsel %vm432_vm1, %v350_v63, %v344_v62  ;;  %v383_v12 = vrot.slane %v382_v4, 2  ;;  %v377_v14 = vrot.slane %v376_v5, 2 }
  0xc4   : > { %v435_v17 = vsel %vm434_vm2, %v356_v9, %v433_v11 }
  0xc5   : > { %v437_v18 = vsel %vm436_vm3, %v362_v10, %v435_v17  ;;  %v384_v19 = vadd.f32 %v383_v12, %v382_v4  ;;  %v378_v20 = vadd.f32 %v377_v14, %v376_v5 }
  0xc6   : > { %v439_v23 = vsel %vm438_vm4, %v368_v15, %v437_v18 }
  0xc7   : > { %v385_v21 = vrot.slane %v384_v19, 1  ;;  %v379_v22 = vrot.slane %v378_v20, 1  ;;  %v441_v33 = vsel %vm440_vm5, %v374_v24, %v439_v23 }
  0xc9   : > { %v386_v25 = vadd.f32 %v385_v21, %v384_v19  ;;  %v380_v26 = vadd.f32 %v379_v22, %v378_v20 }
  0xcb   : > { %v443_v2 = vsel %vm442_vm6, %v380_v26, %v441_v33 }
  0xcc   : > { %v445_v34 = vsel %vm444_vm7, %v386_v25, %v443_v2 }
  0xcd   : > { %v463_v38 = vand.u32 4294901760, %v445_v34 }
  0xcf   : > { %553 = vmatmul.f32.vlgmr.msra.gmra.mxu1 %v463_v38  ;;  %v464_v41 = vsub.f32 %v445_v34, %v463_v38 }
  0xd1   : > { %591 = vmatmul.f32.vlgmr.msra.gmra.mxu2 %v464_v41  ;;  %v465_v50 = vand.u32 4294901760, %v464_v41 }
  0xd3   : > { %614 = vmatmul.f32.vlgmr.msra.gmra.mxu3 %v465_v50  ;;  %v466_v52 = vsub.f32 %v464_v41, %v465_v50 }
  0xd5   : > { %v467_v53 = vand.u32 4294901760, %v466_v52 }
  0xd7   : > { %468 = vmatmul.f32.vlgmr.msra.gmra.mxu0 %v467_v53  ;;  %688 = vmatmul.f32.vlgmr.msrb.gmra.mxu1 %v463_v38 }
  0xdf   : > { %667 = vmatmul.f32.vlgmr.msrb.gmra.mxu0 %v463_v38  ;;  %v273_v54 = vpop.xlane.xlu2 %272 }
  0xe0   : > { %v274_v55 = vmax.f32 %v273_v54, 1e-09  ;;  %v423_v0 = vmul.f32 %v953_v60, %v273_v54 }
  0xe2   : > { %954 = vrcp.f32 %v274_v55  ;;  %vm697_vm8 = vweird.f32 %v274_v55  ;;  %v703_v27 = vand.u32 2147483648, %v274_v55  ;;  %v701_v30 = vand.u32 2147483647, %v274_v55 }
  0xe4   : > { %v704_v36 = vor.u32 1.1754944e-38, %v703_v27  ;;  %vm702_vm11 = vcmp.eq.f32.partialorder %v701_v30, 8.507059e+37 }
  0xe8   : > { %v955_v56 = vpop.eup %954 }
  0xe9   : > { %v693_v59 = vmul.f32 %v955_v56, %v274_v55  ;;  %vm698_vm9 = vweird.f32 %v955_v56 }
  0xea   : > { %vm699_vm10 = vmor %vm697_vm8, %vm698_vm9 }
  0xeb   : > { %v694_v61 = vsub.f32 1.0, %v693_v59 }
  0xed   : > { %v695_v7 = vmul.f32 %v955_v56, %v694_v61 }
  0xef   : > { %v696_v29 = vadd.f32 %v955_v56, %v695_v7 }
  0xf1   : > { %v700_v39 = vsel %vm699_vm10, %v955_v56, %v696_v29 }
  0xf2   : > { %v705_v44 = vsel %vm702_vm11, %v704_v36, %v700_v39 }
 0x14c   : > { %v554_v1 = vpop.f32.mrf.mxu1 }
 0x154   : > { %v469_v3 = vpop.f32.mrf.mxu0  ;;  %v592_v13 = vpop.f32.mrf.mxu2 }
 0x155   : > { %v470_v6 = vadd.f32 %v469_v3, %v423_v0  ;;  %v689_v40 = vpop.f32.mrf.mxu1 }
 0x156   : > { %v615_v31 = vpop.f32.mrf.mxu3 }
 0x157   : > { %v555_v8 = vadd.f32 %v554_v1, %v470_v6 }
 0x159   : > { %v593_v28 = vadd.f32 %v592_v13, %v555_v8 }
 0x15b   : > { %v616_v32 = vadd.f32 %v615_v31, %v593_v28 }
 0x15c   : > { %v668_v35 = vpop.f32.mrf.mxu0 }
 0x15d   : > { %v669_v37 = vadd.f32 %v668_v35, %v616_v32 }
 0x15f   : > { %v690_v42 = vadd.f32 %v689_v40, %v669_v37 }
 0x161   : > { %v706_v45 = vmul.f32 %v705_v44, %v690_v42 }
 0x163   : > { %707 = vst [vmem:[%s247_s20] sm:$0xff] %v706_v45 }
 0x164   : > { %1043 = shalt.err (!%p1040_p12)
}
 0x165   : > { %897 = dma.vmem_to_hbm [thread:$0]  (%p1185_p3), %s722_s19, 128, %s724_s24, %s709_s6  }
 0x166 PF: > { %s735_s10 = sand.u32 1, %s1074_s15   ;;  %p1544_p13 = scmp.ge.s32.totalorder %s1086_s18, 2 }
 0x167   : > { %s736_s27 = scalar_lea.sflag [#allocation4], %s735_s10 }
 0x168   : > { %p908_p0 = pnand %p1544_p13, %p1151_p6 }
 0x16a   : > { %p909_p5 = pneg %p908_p0 }
 0x16c   : > { %1069 = dma.done.wait (%p909_p5), %s736_s27, 128  }
 0x16d   : > { %1071 = vsyncadd (%p909_p5), %s736_s27, 4294967168  ;;  %p18_p7 = scmp.ge.s32.totalorder %s1169_s29, 4   ;;  %s1545_s15 = smov %s1078_s16 }
 0x16e   : > { %s1546_s16 = smov %s1082_s17  ;;  %s1547_s17 = smov %s1181_s8 }
 0x16f   : > { %s1548_s18 = smov %s1169_s29  ;;  %20 = sbr.rel (!%p18_p7) target bundleno = 6 (0x6), region = 88 }
 0x174   :  { %742 = vsyncpa [#allocation3], 1 }
 0x175   :  { %744 = vsyncpa [#allocation3 + $0x1], 1 }
 0x176   :  { %745 = vsyncpa [#allocation6], 1 }
 0x177   :  { %746 = vsyncpa [#allocation4], 1 }
 0x178   :  { %748 = vsyncpa [#allocation4 + $0x1], 1 }

</bundles_post_ra>
